<compile_context>
chip_gen: v6e
topology: v6e:2x2x1
jax: 0.10.0
libtpu: 0.0.40
codegen_flags: <defaults>
</compile_context>

<pallas_src>
import functools

import jax
import jax.numpy as jnp
from jax.experimental import pallas as pl
from jax.experimental.pallas import tpu as pltpu

HIDDEN = 256


def _round_up(x, m):
    return (x + m - 1) // m * m


def _critic_kernel(x_ref, w1_ref, b1_ref, w2_ref, b2_ref, w3_ref, b3_ref,
                   out_ref, *, compute_dtype):
    # x_ref:  (TB, D)              w1_ref: (D, 256)   compute_dtype
    # b1_ref: (1, 256) f32         w2_ref: (256, 256) compute_dtype
    # b2_ref: (1, 256) f32         w3_ref: (1, 256)   compute_dtype
    # b3_ref: (1, 1)   f32 (SMEM)  out_ref: (1, TB)   f32  (lane-dense)
    x = x_ref[...].astype(compute_dtype)

    # Layer 1: Linear + ReLU (MXU matmul, f32 accumulation; bias/ReLU on VPU).
    h1 = jnp.dot(x, w1_ref[...], preferred_element_type=jnp.float32)
    h1 = jnp.maximum(h1 + b1_ref[...], 0.0)

    # Layer 2: Linear + ReLU.
    h2 = jnp.dot(h1.astype(compute_dtype), w2_ref[...],
                 preferred_element_type=jnp.float32)
    h2 = jnp.maximum(h2 + b2_ref[...], 0.0)

    # Layer 3: Linear(256 -> 1) on the (idle) MXU, contracting h2's last axis
    # against the (1, 256) weight row.  Result is already a lane-dense
    # (1, TB) vector -> unmasked full-lane store, contiguous writeback DMA.
    v = jax.lax.dot_general(
        w3_ref[...], h2.astype(compute_dtype),
        dimension_numbers=(((1,), (1,)), ((), ())),
        preferred_element_type=jnp.float32)               # (1, TB)
    out_ref[...] = (v + b3_ref[0, 0]).astype(out_ref.dtype)


def _choose_tile(batch, block_batch):
    """Pick a batch tile (multiple of 128 so the lane-dense output block is
    always (8,128)-friendly).  Ensure >= 2 grid steps for v7x megacore when
    the batch is large enough to split."""
    block_batch = max(128, _round_up(block_batch, 128))
    tb = min(block_batch, _round_up(batch, 128))
    if batch >= 512 and pl.cdiv(batch, tb) < 2:
        tb = max(128, _round_up(pl.cdiv(batch, 2), 128))
    return tb


def _vmem_limit_bytes(tb, d, x_itemsize, c_itemsize):
    lanes = lambda n: _round_up(n, 128)
    subl = lambda n: _round_up(n, 8)
    est = 0
    est += 2 * subl(tb) * lanes(d) * x_itemsize            # x tiles (dbl-buffered)
    est += 2 * subl(1) * lanes(tb) * 4                     # out tiles
    est += 2 * subl(d) * lanes(HIDDEN) * c_itemsize        # w1
    est += 2 * subl(HIDDEN) * lanes(HIDDEN) * c_itemsize   # w2
    est += 2 * subl(1) * lanes(HIDDEN) * c_itemsize        # w3
    est += 4 * subl(1) * lanes(HIDDEN) * 4                 # b1, b2
    est += 4 * subl(tb) * lanes(HIDDEN) * 4                # h1/h2/cast temporaries
    return min(max(int(est * 1.5) + (8 << 20), 32 << 20), 64 << 20)


def critic_forward(state, params, *, block_batch=1024,
                   compute_dtype=jnp.bfloat16):
    """Critic forward pass.

    state:  (B, D) float32 or bfloat16.
    params: dict of weights/biases (see init_params).
    Returns (B, 1) float32.

    compute_dtype=jnp.bfloat16 (default) runs the MXU in bf16 with f32
    accumulation (~1e-3 agreement with PyTorch f32).  Pass
    compute_dtype=jnp.float32 for exact f32 parity (correctness mode; notably
    slower on v5e where f32 matmul is multi-pass).
    """
    w1, b1, w2, b2, w3, b3 = (
        params["w1"], params["b1"], params["w2"],
        params["b2"], params["w3"], params["b3"],
    )
    B, D = state.shape
    if B == 0:
        return jnp.zeros((0, 1), jnp.float32)

    TB = _choose_tile(B, block_batch)
    num_tiles = pl.cdiv(B, TB)
    out_len = num_tiles * TB
    grid = (num_tiles,)

    # Cast MXU-facing weights once outside the kernel; biases stay f32.
    w1c = w1.astype(compute_dtype)
    w2c = w2.astype(compute_dtype)
    w3c = w3.astype(compute_dtype)

    kernel = functools.partial(_critic_kernel, compute_dtype=compute_dtype)

    out = pl.pallas_call(
        kernel,
        out_shape=jax.ShapeDtypeStruct((1, out_len), jnp.float32),
        grid=grid,
        in_specs=[
            pl.BlockSpec((TB, D), lambda i: (i, 0)),            # x: streamed per tile
            pl.BlockSpec((D, HIDDEN), lambda i: (0, 0)),        # w1: VMEM-resident
            pl.BlockSpec((1, HIDDEN), lambda i: (0, 0)),        # b1
            pl.BlockSpec((HIDDEN, HIDDEN), lambda i: (0, 0)),   # w2: VMEM-resident
            pl.BlockSpec((1, HIDDEN), lambda i: (0, 0)),        # b2
            pl.BlockSpec((1, HIDDEN), lambda i: (0, 0)),        # w3 row
            pl.BlockSpec(memory_space=pltpu.MemorySpace.SMEM),  # b3 scalar
        ],
        out_specs=pl.BlockSpec((1, TB), lambda i: (0, i)),      # lane-dense output
        compiler_params=pltpu.CompilerParams(
            dimension_semantics=("parallel",),
            vmem_limit_bytes=_vmem_limit_bytes(
                TB, D, state.dtype.itemsize, jnp.dtype(compute_dtype).itemsize),
        ),
    )(state, w1c, b1, w2c, b2, w3c, b3)

    # (1, num_tiles*TB) -> (B, 1); trailing garbage columns (from the OOB rows
    # of the partial last tile) are dropped here and never read downstream.
    return out.reshape(-1)[:B].reshape(B, 1)


def init_params(key, input_dim):
    """Deterministic init mimicking PyTorch's default Linear init
    (uniform(-1/sqrt(fan_in), 1/sqrt(fan_in))).  Weights stored (in, out);
    w3 is kept as the (1, 256) row used by the final MXU contraction."""
    ks = jax.random.split(key, 6)

    def linear(kw, kb, fan_in, fan_out):
        bound = 1.0 / jnp.sqrt(fan_in)
        w = jax.random.uniform(kw, (fan_in, fan_out), jnp.float32, -bound, bound)
        b = jax.random.uniform(kb, (1, fan_out), jnp.float32, -bound, bound)
        return w, b

    w1, b1 = linear(ks[0], ks[1], input_dim, HIDDEN)
    w2, b2 = linear(ks[2], ks[3], HIDDEN, HIDDEN)
    w3t, b3 = linear(ks[4], ks[5], HIDDEN, 1)     # (256, 1), (1, 1)
    w3 = w3t.reshape(1, HIDDEN)                   # store as (1, 256) row
    return {"w1": w1, "b1": b1, "w2": w2, "b2": b2, "w3": w3, "b3": b3}


def critic_forward_ref(state, params, *, compute_dtype=jnp.float32):
    """Pure-JAX reference (same dtype policy as the kernel)."""
    cd = compute_dtype
    h1 = jnp.dot(state.astype(cd), params["w1"].astype(cd),
                 preferred_element_type=jnp.float32)
    h1 = jnp.maximum(h1 + params["b1"], 0.0)
    h2 = jnp.dot(h1.astype(cd), params["w2"].astype(cd),
                 preferred_element_type=jnp.float32)
    h2 = jnp.maximum(h2 + params["b2"], 0.0)
    v = jnp.dot(h2.astype(cd), params["w3"].astype(cd).T,
                preferred_element_type=jnp.float32)
    return v + params["b3"]


if __name__ == "__main__":
    key = jax.random.PRNGKey(0)
    k_params, k_state, k_state2 = jax.random.split(key, 3)

    batch, input_dim = 8, 32            # Critic(input_dims=(32,))
    params = init_params(k_params, input_dim)
    state = jax.random.normal(k_state, (batch, input_dim), dtype=jnp.float32)

    # 1) bf16-at-the-MXU fast path vs. matching bf16 reference.
    v_bf16 = jax.block_until_ready(
        critic_forward(state, params, compute_dtype=jnp.bfloat16))
    r_bf16 = critic_forward_ref(state, params, compute_dtype=jnp.bfloat16)
    assert v_bf16.shape == (batch, 1)
    assert jnp.allclose(v_bf16, r_bf16, atol=2e-3, rtol=2e-3)

    # 2) Exact f32 parity mode vs. f32 reference (PyTorch semantics).
    v_f32 = jax.block_until_ready(
        critic_forward(state, params, compute_dtype=jnp.float32))
    r_f32 = critic_forward_ref(state, params, compute_dtype=jnp.float32)
    assert jnp.allclose(v_f32, r_f32, atol=2e-4, rtol=2e-4)

    # 3) Multi-tile grid + partial last tile (B not a multiple of TB), no pad.
    state2 = jax.random.normal(k_state2, (1000, input_dim), dtype=jnp.float32)
    v2 = jax.block_until_ready(
        critic_forward(state2, params, block_batch=256,
                       compute_dtype=jnp.bfloat16))
    r2 = critic_forward_ref(state2, params, compute_dtype=jnp.bfloat16)
    assert v2.shape == (1000, 1)
    assert jnp.allclose(v2, r2, atol=2e-3, rtol=2e-3)

    print("KERNEL_OK")
</pallas_src>

<mosaic_0001>
module attributes {stable_mosaic.version = 11 : i64} {
  func.func @_critic_kernel(%arg0: i32, %arg1: memref<128x32xf32, #tpu.memory_space<vmem>>, %arg2: memref<32x256xbf16, #tpu.memory_space<vmem>>, %arg3: memref<1x256xf32, #tpu.memory_space<vmem>>, %arg4: memref<256x256xbf16, #tpu.memory_space<vmem>>, %arg5: memref<1x256xf32, #tpu.memory_space<vmem>>, %arg6: memref<1x256xbf16, #tpu.memory_space<vmem>>, %arg7: memref<1x1xf32, #tpu.memory_space<smem>>, %arg8: memref<1x128xf32, #tpu.memory_space<vmem>>) attributes {dimension_semantics = [#tpu.dimension_semantics<parallel>], iteration_bounds = array<i64: 1>, scalar_prefetch = 0 : i64, scratch_operands = 0 : i64, tpu.core_type = #tpu.core_type<tc>, window_params = [{transform_indices = @transform_0, window_bounds = array<i64: 128, 32>}, {pipeline_mode = #tpu.pipeline_mode<synchronous>, transform_indices = @transform_1, window_bounds = array<i64: 32, 256>}, {pipeline_mode = #tpu.pipeline_mode<synchronous>, transform_indices = @transform_2, window_bounds = array<i64: 1, 256>}, {pipeline_mode = #tpu.pipeline_mode<synchronous>, transform_indices = @transform_3, window_bounds = array<i64: 256, 256>}, {pipeline_mode = #tpu.pipeline_mode<synchronous>, transform_indices = @transform_4, window_bounds = array<i64: 1, 256>}, {pipeline_mode = #tpu.pipeline_mode<synchronous>, transform_indices = @transform_5, window_bounds = array<i64: 1, 256>}, {transform_indices = @transform_6, window_bounds = array<i64: 1, 1>}, {transform_indices = @transform_7, window_bounds = array<i64: 1, 128>}]} {
    %c0 = arith.constant 0 : index
    %c0_0 = arith.constant 0 : index
    %0 = vector.load %arg1[%c0, %c0_0] : memref<128x32xf32, #tpu.memory_space<vmem>>, vector<128x32xf32>
    %1 = arith.truncf %0 : vector<128x32xf32> to vector<128x32xbf16>
    %c0_1 = arith.constant 0 : index
    %c0_2 = arith.constant 0 : index
    %2 = vector.load %arg2[%c0_1, %c0_2] : memref<32x256xbf16, #tpu.memory_space<vmem>>, vector<32x256xbf16>
    %cst = arith.constant dense<0.000000e+00> : vector<128x256xf32>
    %3 = tpu.matmul %1, %2, %cst {dimension_numbers = #tpu.dot_dimension_numbers<[1], [0], [0], [1], [0, 0, 1, 1], [], []>} : vector<128x32xbf16>, vector<32x256xbf16>, vector<128x256xf32> -> vector<128x256xf32>
    %c0_3 = arith.constant 0 : index
    %c0_4 = arith.constant 0 : index
    %4 = vector.load %arg3[%c0_3, %c0_4] : memref<1x256xf32, #tpu.memory_space<vmem>>, vector<1x256xf32>
    %5 = vector.broadcast %4 : vector<1x256xf32> to vector<128x256xf32>
    %6 = arith.addf %3, %5 : vector<128x256xf32>
    %cst_5 = arith.constant 0.000000e+00 : f32
    %7 = vector.broadcast %cst_5 : f32 to vector<128x256xf32>
    %8 = arith.maximumf %6, %7 : vector<128x256xf32>
    %9 = arith.truncf %8 : vector<128x256xf32> to vector<128x256xbf16>
    %c0_6 = arith.constant 0 : index
    %c0_7 = arith.constant 0 : index
    %10 = vector.load %arg4[%c0_6, %c0_7] : memref<256x256xbf16, #tpu.memory_space<vmem>>, vector<256x256xbf16>
    %cst_8 = arith.constant dense<0.000000e+00> : vector<128x256xf32>
    %11 = tpu.matmul %9, %10, %cst_8 {dimension_numbers = #tpu.dot_dimension_numbers<[1], [0], [0], [1], [0, 0, 1, 1], [], []>} : vector<128x256xbf16>, vector<256x256xbf16>, vector<128x256xf32> -> vector<128x256xf32>
    %c0_9 = arith.constant 0 : index
    %c0_10 = arith.constant 0 : index
    %12 = vector.load %arg5[%c0_9, %c0_10] : memref<1x256xf32, #tpu.memory_space<vmem>>, vector<1x256xf32>
    %13 = vector.broadcast %12 : vector<1x256xf32> to vector<128x256xf32>
    %14 = arith.addf %11, %13 : vector<128x256xf32>
    %cst_11 = arith.constant 0.000000e+00 : f32
    %15 = vector.broadcast %cst_11 : f32 to vector<128x256xf32>
    %16 = arith.maximumf %14, %15 : vector<128x256xf32>
    %c0_12 = arith.constant 0 : index
    %c0_13 = arith.constant 0 : index
    %17 = vector.load %arg6[%c0_12, %c0_13] : memref<1x256xbf16, #tpu.memory_space<vmem>>, vector<1x256xbf16>
    %18 = arith.truncf %16 : vector<128x256xf32> to vector<128x256xbf16>
    %cst_14 = arith.constant dense<0.000000e+00> : vector<1x128xf32>
    %19 = tpu.matmul %17, %18, %cst_14 {dimension_numbers = #tpu.dot_dimension_numbers<[1], [1], [0], [0], [0, 0, 1, 0], [], []>} : vector<1x256xbf16>, vector<128x256xbf16>, vector<1x128xf32> -> vector<1x128xf32>
    %c0_15 = arith.constant 0 : index
    %c0_16 = arith.constant 0 : index
    %20 = memref.load %arg7[%c0_15, %c0_16] : memref<1x1xf32, #tpu.memory_space<smem>>
    %21 = vector.broadcast %20 : f32 to vector<1x128xf32>
    %22 = arith.addf %19, %21 : vector<1x128xf32>
    %c0_17 = arith.constant 0 : index
    %c0_18 = arith.constant 0 : index
    %23 = vector.load %arg8[%c0_17, %c0_18] : memref<1x128xf32, #tpu.memory_space<vmem>>, vector<1x128xf32>
    tpu.vector_store %arg8[%c0_17, %c0_18], %22 {strides = array<i32>} : memref<1x128xf32, #tpu.memory_space<vmem>>, vector<1x128xf32>,
    return
  }
  func.func @transform_0(%arg0: i32) -> (i32, i32) {
    %c0_i32 = arith.constant 0 : i32
    %c0_i32_0 = arith.constant 0 : i32
    return %arg0, %c0_i32 : i32, i32
  }
  func.func @transform_1(%arg0: i32) -> (i32, i32) {
    %c0_i32 = arith.constant 0 : i32
    %c0_i32_0 = arith.constant 0 : i32
    %c0_i32_1 = arith.constant 0 : i32
    return %c0_i32, %c0_i32_0 : i32, i32
  }
  func.func @transform_2(%arg0: i32) -> (i32, i32) {
    %c0_i32 = arith.constant 0 : i32
    %c0_i32_0 = arith.constant 0 : i32
    %c0_i32_1 = arith.constant 0 : i32
    return %c0_i32, %c0_i32_0 : i32, i32
  }
  func.func @transform_3(%arg0: i32) -> (i32, i32) {
    %c0_i32 = arith.constant 0 : i32
    %c0_i32_0 = arith.constant 0 : i32
    %c0_i32_1 = arith.constant 0 : i32
    return %c0_i32, %c0_i32_0 : i32, i32
  }
  func.func @transform_4(%arg0: i32) -> (i32, i32) {
    %c0_i32 = arith.constant 0 : i32
    %c0_i32_0 = arith.constant 0 : i32
    %c0_i32_1 = arith.constant 0 : i32
    return %c0_i32, %c0_i32_0 : i32, i32
  }
  func.func @transform_5(%arg0: i32) -> (i32, i32) {
    %c0_i32 = arith.constant 0 : i32
    %c0_i32_0 = arith.constant 0 : i32
    %c0_i32_1 = arith.constant 0 : i32
    return %c0_i32, %c0_i32_0 : i32, i32
  }
  func.func @transform_6(%arg0: i32) -> (i32, i32) {
    %c0_i32 = arith.constant 0 : i32
    %c0_i32_0 = arith.constant 0 : i32
    %c0_i32_1 = arith.constant 0 : i32
    return %c0_i32, %c0_i32_0 : i32, i32
  }
  func.func @transform_7(%arg0: i32) -> (i32, i32) {
    %c0_i32 = arith.constant 0 : i32
    %c0_i32_0 = arith.constant 0 : i32
    return %c0_i32, %arg0 : i32, i32
  }
}

</mosaic_0001>

<bundles_post_ra>
// kernel: tpu_custom_call.1
= control target key start
LH: loop header
LB: loop body
LE: loop exit
PB: predicated region body
PF: predicated region fallthrough
CT: control target
= control target key end

     0   :  { %13 = vsyncpa [#allocation4], 0  ;;  %s1168_s0 = inlined_call_operand.hbm [shape: f32[8,32], index: 0, kind: input, shape index: {}]   ;;  %s1169_s1 = inlined_call_operand.hbm [shape: bf16[32,256], index: 1, kind: input, shape index: {}]   ;;  %s1170_s2 = inlined_call_operand.vmem [shape: f32[1,256], index: 2, kind: input, shape index: {}]   ;;  %s1171_s3 = inlined_call_operand.hbm [shape: bf16[256,256], index: 3, kind: input, shape index: {}]   ;;  %s1172_s4 = inlined_call_operand.vmem [shape: f32[1,256], index: 4, kind: input, shape index: {}]   ;;  %s1173_s5 = inlined_call_operand.vmem [shape: bf16[1,256], index: 5, kind: input, shape index: {}]   ;;  %s1174_s6 = inlined_call_operand.<no memory space> [shape: f32[1,1], index: 6, kind: input, shape index: {}]   ;;  %s1175_s7 = inlined_call_operand.hbm [shape: f32[1,128], index: 7, kind: output, shape index: {}]  }
   0x1   :  { %14 = vsyncpa [#allocation7], 0 }
   0x2   :  { %15 = vsyncpa [#allocation5], 0 }
   0x3   :  { %20 = vsyncadd [#allocation4], 1920  ;;  %s959_s24 = smov [#allocation6]   ;;  %s960_s26 = smov [#allocation3]  }
   0x4   :  { %s33_s25 = sshll.u32 %s959_s24, 4  ;;  %s21_s27 = sshll.u32 %s960_s26, 4  ;;  %s34_s25 = int_to_ptr.vmem [resolvable:$true] %s33_s25  ;;  %s22_s27 = int_to_ptr.vmem [resolvable:$true] %s21_s27 }
   0x5   :  { %s881_s28 = scalar_lea.vmem %s34_s25, 512  ;;  %p886_p1 = scmp.lt.s32.totalorder %s34_s25, %s34_s25 }
   0x6   :  { %p882_p0 = scmp.ne.s32.totalorder %s34_s25, %s881_s28  ;;  %p887_p2 = scmp.lt.s32.totalorder %s881_s28, %s881_s28 }
   0x8   :  { %p888_p3 = por %p887_p2, %p886_p1 }
   0xa   :  { %p889_p4 = pnand %p888_p3, %p882_p0 }
   0xc   :  { %892 = shalt.err (!%p889_p4)
}
   0xd   :  { %s961_s29 = smov 128   ;;  %s962_s30 = smov 8  }
   0xe   :  { %39 = dma.hbm_to_vmem [thread:$0]  %s1169_s1, 512, %s34_s25, [#allocation7], %s961_s29, %s961_s29, %s962_s30  }
   0xf   :  { %s901_s10 = scalar_lea.vmem %s22_s27, 128  ;;  %s905_s11 = scalar_lea.vmem %s22_s27, 2048 }
  0x10   :  { %p902_p5 = scmp.ne.s32.totalorder %s22_s27, %s901_s10  ;;  %p906_p6 = scmp.lt.s32.totalorder %s22_s27, %s22_s27 }
  0x11   :  { %p907_p7 = scmp.lt.s32.totalorder %s905_s11, %s901_s10 }
  0x13   :  { %p908_p8 = por %p907_p7, %p906_p6 }
  0x15   :  { %p909_p9 = pnand %p908_p8, %p902_p5 }
  0x17   :  { %912 = shalt.err (!%p909_p9)
}
  0x18   :  { %27 = dma.hbm_to_vmem [thread:$0]  %s1168_s0, 128, %s22_s27, [#allocation4], %s961_s29, %s961_s29, %s962_s30  }
  0x19   :  { %s963_s14 = smov [#allocation8]  }
  0x1a   :  { %s47_s15 = sshll.u32 %s963_s14, 4  ;;  %s48_s15 = int_to_ptr.vmem [resolvable:$true] %s47_s15 }
  0x1b   :  { %s921_s16 = scalar_lea.vmem %s48_s15, 4096  ;;  %p926_p11 = scmp.lt.s32.totalorder %s48_s15, %s48_s15 }
  0x1c   :  { %p922_p10 = scmp.ne.s32.totalorder %s48_s15, %s921_s16  ;;  %p927_p12 = scmp.lt.s32.totalorder %s921_s16, %s921_s16 }
  0x1e   :  { %p928_p13 = por %p927_p12, %p926_p11 }
  0x20   :  { %p929_p0 = pnand %p928_p13, %p922_p10 }
  0x22   :  { %932 = shalt.err (!%p929_p0)
}
  0x23   :  { %53 = dma.hbm_to_vmem [thread:$0]  %s1171_s3, 4096, %s48_s15, [#allocation7], %s961_s29, %s961_s29, %s962_s30  }
  0x24   :  { %953 = dma.done.wait [#allocation4], 2048  }
  0x25   :  { %954 = vsyncadd [#allocation4], 4294965248 }
  0x26   :  { %955 = dma.done.wait [#allocation7], 4608  }
  0x27   :  { %956 = vsyncadd [#allocation7], 4294962688  ;;  %v964_v0 = vmov 0   ;;  %v819_v1 = vld [vmem:[#allocation6 + $0x14] ss:$8 sps:$4 sm:$0xff]   ;;  %v70_v5 = vld [vmem:[#allocation3] sm:$0xff]  ;;  %v100_v61 = vlaneseq }
  0x28   :  { %187 = vmatprep.mubr.bf16.mxu0 %v964_v0  ;;  %v821_v2 = vld [vmem:[#allocation6 + $0x10] ss:$8 sps:$4 sm:$0xff]   ;;  %167 = vmatprep.subr.bf16.mxu0 %v819_v1  ;;  %v822_v3 = vld [vmem:[#allocation6 + $0x4] ss:$8 sps:$4 sm:$0xff]   ;;  %v824_v4 = vld [vmem:[#allocation6] ss:$8 sps:$4 sm:$0xff]  }
  0x29   :  { %168 = vmatpush1.bf16.msra.mxu0 %v821_v2  ;;  %v71_v6 = vld [vmem:[#allocation3 + $0x8] sm:$0xff]  ;;  %vm130_vm0 = vcmask 261120   ;;  %v825_v8 = vld [vmem:[#allocation8 + $0x74] ss:$8 sps:$4 sm:$0xff]   ;;  %v827_v9 = vld [vmem:[#allocation8 + $0x70] ss:$8 sps:$4 sm:$0xff]  }
  0x2a   :  { %169 = vmatprep.subr.bf16.mxu0 %v822_v3  ;;  %v86_v7 = vpack.c.bf16 %v71_v6, %v70_v5  ;;  %v72_v10 = vld [vmem:[#allocation3 + $0x10] sm:$0xff]  ;;  %520 = vmatprep.subr.bf16.mxu1 %v825_v8  ;;  %v828_v11 = vld [vmem:[#allocation8 + $0x64] ss:$8 sps:$4 sm:$0xff]   ;;  %v73_v12 = vld [vmem:[#allocation3 + $0x18] sm:$0xff]  ;;  %v1032_v62 = vshrl.u32 %v100_v61, 7  ;;  %s966_s21 = smov [#allocation9]  }
  0x2b   :  { %521 = vmatpush1.bf16.msra.mxu1 %v827_v9  ;;  %v830_v13 = vld [vmem:[#allocation8 + $0x60] ss:$8 sps:$4 sm:$0xff]   ;;  %v831_v14 = vld [vmem:[#allocation8 + $0x54] ss:$8 sps:$4 sm:$0xff]   ;;  %v87_v15 = vpack.c.bf16 %v73_v12, %v72_v10  ;;  %v833_v16 = vld [vmem:[#allocation8 + $0x50] ss:$8 sps:$4 sm:$0xff]  }
  0x2c   :  { %522 = vmatprep.subr.bf16.mxu1 %v828_v11  ;;  %v834_v17 = vld [vmem:[#allocation8 + $0x44] ss:$8 sps:$4 sm:$0xff]   ;;  %v836_v20 = vld [vmem:[#allocation8 + $0x40] ss:$8 sps:$4 sm:$0xff]   ;;  %v837_v21 = vld [vmem:[#allocation8 + $0x34] ss:$8 sps:$4 sm:$0xff]  }
  0x2d   :  { %170 = vmatpush1.bf16.msra.mxu0 %v824_v4  ;;  %v74_v18 = vld [vmem:[#allocation3 + $0x20] sm:$0xff]  ;;  %v75_v19 = vld [vmem:[#allocation3 + $0x28] sm:$0xff]  ;;  %v839_v23 = vld [vmem:[#allocation8 + $0x30] ss:$8 sps:$4 sm:$0xff]   ;;  %v106_v63 = vsub.s32 1, %v1032_v62  ;;  %s756_s22 = sshll.u32 %s966_s21, 4  ;;  %s757_s22 = int_to_ptr.vmem [resolvable:$true] %s756_s22 }
  0x2e   :  { %v88_v22 = vpack.c.bf16 %v75_v19, %v74_v18  ;;  %v840_v24 = vld [vmem:[#allocation8 + $0x24] ss:$8 sps:$4 sm:$0xff]   ;;  %v76_v25 = vld [vmem:[#allocation3 + $0x30] sm:$0xff]  ;;  %v77_v26 = vld [vmem:[#allocation3 + $0x38] sm:$0xff]  ;;  %s933_s23 = scalar_lea.vmem %s757_s22, 16  ;;  %s937_s24 = scalar_lea.vmem %s757_s22, 32 }
  0x2f   :  { %523 = vmatpush1.bf16.msra.mxu1 %v830_v13  ;;  %v842_v27 = vld [vmem:[#allocation8 + $0x20] ss:$8 sps:$4 sm:$0xff]   ;;  %v843_v28 = vld [vmem:[#allocation8 + $0x14] ss:$8 sps:$4 sm:$0xff]   ;;  %v89_v29 = vpack.c.bf16 %v77_v26, %v76_v25  ;;  %v845_v30 = vld [vmem:[#allocation8 + $0x10] ss:$8 sps:$4 sm:$0xff]   ;;  %p934_p1 = scmp.ne.s32.totalorder %s757_s22, %s933_s23  ;;  %p938_p2 = scmp.lt.s32.totalorder %s757_s22, %s757_s22 }
  0x30   :  { %770 = vmatmul.mubr.msk.bf16.vlgmr.msra.gmra.mxu0 %vm130_vm0, %v86_v7  ;;  %524 = vmatprep.subr.bf16.mxu1 %v831_v14  ;;  %v846_v31 = vld [vmem:[#allocation8 + $0x4] ss:$8 sps:$4 sm:$0xff]   ;;  %v848_v34 = vld [vmem:[#allocation8] ss:$8 sps:$4 sm:$0xff]   ;;  %v849_v35 = vld [vmem:[#allocation8 + $0xf4] ss:$8 sps:$4 sm:$0xff]   ;;  %p939_p3 = scmp.lt.s32.totalorder %s937_s24, %s933_s23 }
  0x31   :  { %197 = vmatprep.mubr.bf16.mxu0 %v964_v0  ;;  %v78_v32 = vld [vmem:[#allocation3 + $0x40] sm:$0xff]  ;;  %v79_v33 = vld [vmem:[#allocation3 + $0x48] sm:$0xff]  ;;  %v851_v37 = vld [vmem:[#allocation8 + $0xf0] ss:$8 sps:$4 sm:$0xff]  }
  0x32   :  { %v90_v36 = vpack.c.bf16 %v79_v33, %v78_v32  ;;  %v852_v38 = vld [vmem:[#allocation8 + $0xe4] ss:$8 sps:$4 sm:$0xff]   ;;  %v80_v39 = vld [vmem:[#allocation3 + $0x50] sm:$0xff]  ;;  %v81_v40 = vld [vmem:[#allocation3 + $0x58] sm:$0xff]  ;;  %p940_p4 = por %p939_p3, %p938_p2 }
  0x33   :  { %525 = vmatpush1.bf16.msra.mxu1 %v833_v16  ;;  %v854_v41 = vld [vmem:[#allocation8 + $0xe0] ss:$8 sps:$4 sm:$0xff]   ;;  %v855_v42 = vld [vmem:[#allocation8 + $0xd4] ss:$8 sps:$4 sm:$0xff]   ;;  %v91_v43 = vpack.c.bf16 %v81_v40, %v80_v39  ;;  %v857_v44 = vld [vmem:[#allocation8 + $0xd0] ss:$8 sps:$4 sm:$0xff]  }
  0x34   :  { %526 = vmatprep.subr.bf16.mxu1 %v834_v17  ;;  %v858_v45 = vld [vmem:[#allocation8 + $0xc4] ss:$8 sps:$4 sm:$0xff]   ;;  %v860_v48 = vld [vmem:[#allocation8 + $0xc0] ss:$8 sps:$4 sm:$0xff]   ;;  %v861_v49 = vld [vmem:[#allocation8 + $0xb4] ss:$8 sps:$4 sm:$0xff]   ;;  %p941_p5 = pnand %p940_p4, %p934_p1 }
  0x35   :  { %v82_v46 = vld [vmem:[#allocation3 + $0x60] sm:$0xff]  ;;  %v83_v47 = vld [vmem:[#allocation3 + $0x68] sm:$0xff]  ;;  %v863_v51 = vld [vmem:[#allocation8 + $0xb0] ss:$8 sps:$4 sm:$0xff]  }
  0x36   :  { %v92_v50 = vpack.c.bf16 %v83_v47, %v82_v46  ;;  %v84_v52 = vld [vmem:[#allocation3 + $0x70] sm:$0xff]  ;;  %v85_v53 = vld [vmem:[#allocation3 + $0x78] sm:$0xff]  ;;  %v864_v55 = vld [vmem:[#allocation8 + $0xa4] ss:$8 sps:$4 sm:$0xff]  }
  0x37   :  { %527 = vmatpush1.bf16.msra.mxu1 %v836_v20  ;;  %v93_v54 = vpack.c.bf16 %v85_v53, %v84_v52  ;;  %v866_v56 = vld [vmem:[#allocation8 + $0xa0] ss:$8 sps:$4 sm:$0xff]   ;;  %v867_v57 = vld [vmem:[#allocation8 + $0x94] ss:$8 sps:$4 sm:$0xff]   ;;  %v869_v58 = vld [vmem:[#allocation8 + $0x90] ss:$8 sps:$4 sm:$0xff]  }
  0x38   :  { %771 = vmatmul.mubr.msk.bf16.gmra.mxu0 %vm130_vm0, %v87_v15  ;;  %528 = vmatprep.subr.bf16.mxu1 %v837_v21  ;;  %v870_v59 = vld [vmem:[#allocation8 + $0x84] ss:$8 sps:$4 sm:$0xff]   ;;  %v872_v60 = vld [vmem:[#allocation8 + $0x80] ss:$8 sps:$4 sm:$0xff]  }
  0x39   :  { %207 = vmatprep.mubr.bf16.mxu0 %v964_v0  ;;  %v98_v1 = vld [vmem:[%s1170_s2] sm:$0x3] }
  0x3a   :  { %v1041_v3 = vrot.slane %v98_v1, %v106_v63 }
  0x3b   :  { %529 = vmatpush1.bf16.msra.mxu1 %v839_v23 }
  0x3c   :  { %530 = vmatprep.subr.bf16.mxu1 %v840_v24 }
  0x3f   :  { %531 = vmatpush1.bf16.msra.mxu1 %v842_v27 }
  0x40   :  { %772 = vmatmul.mubr.msk.bf16.gmra.mxu0 %vm130_vm0, %v88_v22  ;;  %532 = vmatprep.subr.bf16.mxu1 %v843_v28 }
  0x41   :  { %217 = vmatprep.mubr.bf16.mxu0 %v964_v0 }
  0x43   :  { %533 = vmatpush1.bf16.msra.mxu1 %v845_v30 }
  0x44   :  { %534 = vmatprep.subr.bf16.mxu1 %v846_v31 }
  0x47   :  { %535 = vmatpush1.bf16.msra.mxu1 %v848_v34 }
  0x48   :  { %773 = vmatmul.mubr.msk.bf16.gmra.mxu0 %vm130_vm0, %v89_v29  ;;  %536 = vmatprep.subr.bf16.mxu1 %v849_v35 }
  0x49   :  { %227 = vmatprep.mubr.bf16.mxu0 %v964_v0 }
  0x4b   :  { %537 = vmatpush2.bf16.msra.mxu1 %v851_v37 }
  0x4c   :  { %538 = vmatprep.subr.bf16.mxu1 %v852_v38 }
  0x4f   :  { %539 = vmatpush2.bf16.msra.mxu1 %v854_v41 }
  0x50   :  { %774 = vmatmul.mubr.msk.bf16.gmra.mxu0 %vm130_vm0, %v90_v36  ;;  %540 = vmatprep.subr.bf16.mxu1 %v855_v42 }
  0x51   :  { %237 = vmatprep.mubr.bf16.mxu0 %v964_v0 }
  0x53   :  { %541 = vmatpush2.bf16.msra.mxu1 %v857_v44 }
  0x54   :  { %542 = vmatprep.subr.bf16.mxu1 %v858_v45 }
  0x57   :  { %543 = vmatpush2.bf16.msra.mxu1 %v860_v48 }
  0x58   :  { %775 = vmatmul.mubr.msk.bf16.gmra.mxu0 %vm130_vm0, %v91_v43  ;;  %544 = vmatprep.subr.bf16.mxu1 %v861_v49 }
  0x59   :  { %247 = vmatprep.mubr.bf16.mxu0 %v964_v0 }
  0x5b   :  { %545 = vmatpush2.bf16.msra.mxu1 %v863_v51 }
  0x5c   :  { %546 = vmatprep.subr.bf16.mxu1 %v864_v55 }
  0x5f   :  { %547 = vmatpush2.bf16.msra.mxu1 %v866_v56 }
  0x60   :  { %776 = vmatmul.mubr.msk.bf16.gmra.mxu0 %vm130_vm0, %v92_v50  ;;  %548 = vmatprep.subr.bf16.mxu1 %v867_v57 }
  0x61   :  { %257 = vmatprep.mubr.bf16.mxu0 %v964_v0  ;;  %v102_v0 = vsub.s32 0, %v1032_v62 }
  0x63   :  { %549 = vmatpush2.bf16.msra.mxu1 %v869_v58  ;;  %v1045_v4 = vrot.slane %v98_v1, %v102_v0 }
  0x64   :  { %550 = vmatprep.subr.bf16.mxu1 %v870_v59 }
  0x67   :  { %551 = vmatpush2.bf16.msra.mxu1 %v872_v60 }
  0x68   :  { %777 = vmatmul.mubr.msk.bf16.gmra.mxu0 %vm130_vm0, %v93_v54 }
  0xf0   :  { %v189_v2 = vpop.f32.mrf.mxu0 }
  0xf1   :  { %v190_v9 = vadd.f32 %v189_v2, %v1045_v4 }
  0xf2   :  { %v191_v5 = vpop.f32.mrf.mxu0 }
  0xf3   :  { %v192_v7 = vadd.f32 %v191_v5, %v1041_v3  ;;  %v268_v16 = vmax.f32 %v190_v9, 0.0 }
  0xf4   :  { %v193_v6 = vpop.f32.mrf.mxu0 }
  0xf5   :  { %v194_v8 = vadd.f32 %v193_v6, %v1045_v4  ;;  %v269_v14 = vmax.f32 %v192_v7, 0.0 }
  0xf6   :  { %v195_v10 = vpop.f32.mrf.mxu0 }
  0xf7   :  { %v196_v11 = vadd.f32 %v195_v10, %v1041_v3  ;;  %v270_v12 = vmax.f32 %v194_v8, 0.0 }
  0xf8   :  { %v199_v13 = vpop.f32.mrf.mxu0 }
  0xf9   :  { %v271_v15 = vmax.f32 %v196_v11, 0.0  ;;  %v300_v19 = vpack.c.bf16 %v270_v12, %v268_v16  ;;  %v200_v23 = vadd.f32 %v199_v13, %v1045_v4 }
  0xfa   :  { %v201_v17 = vpop.f32.mrf.mxu0 }
  0xfb   :  { %v301_v18 = vpack.c.bf16 %v271_v15, %v269_v14  ;;  %v202_v21 = vadd.f32 %v201_v17, %v1041_v3  ;;  %v272_v30 = vmax.f32 %v200_v23, 0.0 }
  0xfc   :  { %v203_v20 = vpop.f32.mrf.mxu0 }
  0xfd   :  { %v204_v22 = vadd.f32 %v203_v20, %v1045_v4  ;;  %552 = vmatprep.mubr.bf16.mxu1 %v301_v18  ;;  %v273_v28 = vmax.f32 %v202_v21, 0.0 }
  0xfe   :  { %v205_v24 = vpop.f32.mrf.mxu0  ;;  %553 = vmatmul.mubr.bf16.vlgmr.msra.gmra.mxu1 %v300_v19 }
  0xff   :  { %v206_v25 = vadd.f32 %v205_v24, %v1041_v3  ;;  %v274_v26 = vmax.f32 %v204_v22, 0.0 }
 0x100   :  { %v209_v27 = vpop.f32.mrf.mxu0 }
 0x101   :  { %v275_v29 = vmax.f32 %v206_v25, 0.0  ;;  %v302_v33 = vpack.c.bf16 %v274_v26, %v272_v30  ;;  %v210_v37 = vadd.f32 %v209_v27, %v1045_v4 }
 0x102   :  { %v211_v31 = vpop.f32.mrf.mxu0 }
 0x103   :  { %v303_v32 = vpack.c.bf16 %v275_v29, %v273_v28  ;;  %v212_v35 = vadd.f32 %v211_v31, %v1041_v3  ;;  %v276_v44 = vmax.f32 %v210_v37, 0.0 }
 0x104   :  { %v213_v34 = vpop.f32.mrf.mxu0 }
 0x105   :  { %v214_v36 = vadd.f32 %v213_v34, %v1045_v4  ;;  %562 = vmatprep.mubr.bf16.mxu1 %v303_v32  ;;  %v277_v42 = vmax.f32 %v212_v35, 0.0 }
 0x106   :  { %v215_v38 = vpop.f32.mrf.mxu0  ;;  %563 = vmatmul.mubr.bf16.gmra.mxu1 %v302_v33 }
 0x107   :  { %v216_v39 = vadd.f32 %v215_v38, %v1041_v3  ;;  %v278_v40 = vmax.f32 %v214_v36, 0.0 }
 0x108   :  { %v219_v41 = vpop.f32.mrf.mxu0 }
 0x109   :  { %v279_v43 = vmax.f32 %v216_v39, 0.0  ;;  %v304_v47 = vpack.c.bf16 %v278_v40, %v276_v44  ;;  %v220_v51 = vadd.f32 %v219_v41, %v1045_v4 }
 0x10a   :  { %v221_v45 = vpop.f32.mrf.mxu0 }
 0x10b   :  { %v305_v46 = vpack.c.bf16 %v279_v43, %v277_v42  ;;  %v222_v49 = vadd.f32 %v221_v45, %v1041_v3  ;;  %v280_v58 = vmax.f32 %v220_v51, 0.0 }
 0x10c   :  { %v223_v48 = vpop.f32.mrf.mxu0 }
 0x10d   :  { %v224_v50 = vadd.f32 %v223_v48, %v1045_v4  ;;  %572 = vmatprep.mubr.bf16.mxu1 %v305_v46  ;;  %v281_v56 = vmax.f32 %v222_v49, 0.0 }
 0x10e   :  { %v225_v52 = vpop.f32.mrf.mxu0  ;;  %573 = vmatmul.mubr.bf16.gmra.mxu1 %v304_v47 }
 0x10f   :  { %v226_v53 = vadd.f32 %v225_v52, %v1041_v3  ;;  %v282_v54 = vmax.f32 %v224_v50, 0.0 }
 0x110   :  { %v229_v55 = vpop.f32.mrf.mxu0 }
 0x111   :  { %v283_v57 = vmax.f32 %v226_v53, 0.0  ;;  %v306_v61 = vpack.c.bf16 %v282_v54, %v280_v58  ;;  %v230_v6 = vadd.f32 %v229_v55, %v1045_v4  ;;  %v965_v58 = vmov 1966171168  }
 0x112   :  { %v231_v59 = vpop.f32.mrf.mxu0 }
 0x113   :  { %v307_v60 = vpack.c.bf16 %v283_v57, %v281_v56  ;;  %v232_v2 = vadd.f32 %v231_v59, %v1041_v3  ;;  %v284_v13 = vmax.f32 %v230_v6, 0.0  ;;  %v348_v57 = vld [vmem:[%s1172_s4] sm:$0x3]  ;;  %v694_v59 = vunpack.c.l.s4 %v965_v58 }
 0x114   :  { %v233_v1 = vpop.f32.mrf.mxu0 }
 0x115   :  { %v234_v5 = vadd.f32 %v233_v1, %v1045_v4  ;;  %582 = vmatprep.mubr.bf16.mxu1 %v307_v60  ;;  %v285_v11 = vmax.f32 %v232_v2, 0.0  ;;  %v1089_v60 = vrot.slane %v348_v57, %v102_v0 }
 0x116   :  { %v235_v7 = vpop.f32.mrf.mxu0  ;;  %583 = vmatmul.mubr.bf16.gmra.mxu1 %v306_v61 }
 0x117   :  { %v236_v8 = vadd.f32 %v235_v7, %v1041_v3  ;;  %v286_v9 = vmax.f32 %v234_v5, 0.0  ;;  %v1098_v5 = vrot.slane %v348_v57, %v106_v63 }
 0x118   :  { %v239_v10 = vpop.f32.mrf.mxu0 }
 0x119   :  { %v287_v12 = vmax.f32 %v236_v8, 0.0  ;;  %v308_v16 = vpack.c.bf16 %v286_v9, %v284_v13  ;;  %v240_v20 = vadd.f32 %v239_v10, %v1045_v4 }
 0x11a   :  { %v241_v14 = vpop.f32.mrf.mxu0 }
 0x11b   :  { %v309_v15 = vpack.c.bf16 %v287_v12, %v285_v11  ;;  %v242_v18 = vadd.f32 %v241_v14, %v1041_v3  ;;  %v288_v27 = vmax.f32 %v240_v20, 0.0 }
 0x11c   :  { %v243_v17 = vpop.f32.mrf.mxu0 }
 0x11d   :  { %v244_v19 = vadd.f32 %v243_v17, %v1045_v4  ;;  %592 = vmatprep.mubr.bf16.mxu1 %v309_v15  ;;  %v289_v25 = vmax.f32 %v242_v18, 0.0 }
 0x11e   :  { %v245_v21 = vpop.f32.mrf.mxu0  ;;  %593 = vmatmul.mubr.bf16.gmra.mxu1 %v308_v16 }
 0x11f   :  { %v246_v22 = vadd.f32 %v245_v21, %v1041_v3  ;;  %v290_v23 = vmax.f32 %v244_v19, 0.0 }
 0x120   :  { %v249_v24 = vpop.f32.mrf.mxu0 }
 0x121   :  { %v291_v26 = vmax.f32 %v246_v22, 0.0  ;;  %v310_v30 = vpack.c.bf16 %v290_v23, %v288_v27  ;;  %v250_v34 = vadd.f32 %v249_v24, %v1045_v4 }
 0x122   :  { %v251_v28 = vpop.f32.mrf.mxu0 }
 0x123   :  { %v311_v29 = vpack.c.bf16 %v291_v26, %v289_v25  ;;  %v252_v32 = vadd.f32 %v251_v28, %v1041_v3  ;;  %v292_v41 = vmax.f32 %v250_v34, 0.0 }
 0x124   :  { %v253_v31 = vpop.f32.mrf.mxu0 }
 0x125   :  { %v254_v33 = vadd.f32 %v253_v31, %v1045_v4  ;;  %602 = vmatprep.mubr.bf16.mxu1 %v311_v29  ;;  %v293_v39 = vmax.f32 %v252_v32, 0.0 }
 0x126   :  { %v255_v35 = vpop.f32.mrf.mxu0  ;;  %603 = vmatmul.mubr.bf16.gmra.mxu1 %v310_v30 }
 0x127   :  { %v256_v36 = vadd.f32 %v255_v35, %v1041_v3  ;;  %v294_v37 = vmax.f32 %v254_v33, 0.0 }
 0x128   :  { %v259_v38 = vpop.f32.mrf.mxu0 }
 0x129   :  { %v295_v40 = vmax.f32 %v256_v36, 0.0  ;;  %v312_v44 = vpack.c.bf16 %v294_v37, %v292_v41  ;;  %v260_v48 = vadd.f32 %v259_v38, %v1045_v4 }
 0x12a   :  { %v261_v42 = vpop.f32.mrf.mxu0 }
 0x12b   :  { %v313_v43 = vpack.c.bf16 %v295_v40, %v293_v39  ;;  %v262_v46 = vadd.f32 %v261_v42, %v1041_v3  ;;  %v296_v54 = vmax.f32 %v260_v48, 0.0 }
 0x12c   :  { %v263_v45 = vpop.f32.mrf.mxu0 }
 0x12d   :  { %v264_v47 = vadd.f32 %v263_v45, %v1045_v4  ;;  %612 = vmatprep.mubr.bf16.mxu1 %v313_v43  ;;  %v297_v52 = vmax.f32 %v262_v46, 0.0  ;;  %v1085_v4 = vld.sshfl [vmem:[%s1173_s5] sm:$0x11 pattern:$0x75316420] }
 0x12e   :  { %v265_v49 = vpop.f32.mrf.mxu0  ;;  %613 = vmatmul.mubr.bf16.gmra.mxu1 %v312_v44  ;;  %v692_v61 = vcombine.high %v1085_v4, %v1085_v4 }
 0x12f   :  { %v266_v50 = vadd.f32 %v265_v49, %v1041_v3  ;;  %v298_v51 = vmax.f32 %v264_v47, 0.0  ;;  %v695_v3 = vunpack.c.0.s8 %v694_v59 }
 0x131   :  { %v299_v53 = vmax.f32 %v266_v50, 0.0  ;;  %v314_v56 = vpack.c.bf16 %v298_v51, %v296_v54  ;;  %v1094_v2 = vsub.s32 %v695_v3, %v1032_v62 }
 0x133   :  { %v315_v55 = vpack.c.bf16 %v299_v53, %v297_v52  ;;  %v699_v7 = vrot.slane %v1085_v4, %v1094_v2  ;;  %v706_v8 = vrot.slane %v692_v61, %v1094_v2 }
 0x135   :  { %622 = vmatprep.mubr.bf16.mxu1 %v315_v55  ;;  %741 = vmatprep.mubr.bf16.mxu0 %v706_v8 }
 0x136   :  { %623 = vmatmul.mubr.bf16.gmra.mxu1 %v314_v56 }
 0x1be   :  { %v554_v1 = vpop.f32.mrf.mxu1 }
 0x1bf   :  { %v555_v0 = vadd.f32 %v554_v1, %v1089_v60 }
 0x1c0   :  { %v556_v6 = vpop.f32.mrf.mxu1 }
 0x1c1   :  { %v557_v10 = vadd.f32 %v556_v6, %v1098_v5  ;;  %v633_v13 = vmax.f32 %v555_v0, 0.0 }
 0x1c2   :  { %v558_v9 = vpop.f32.mrf.mxu1 }
 0x1c3   :  { %v559_v11 = vadd.f32 %v558_v9, %v1089_v60  ;;  %v634_v15 = vmax.f32 %v557_v10, 0.0 }
 0x1c4   :  { %v560_v12 = vpop.f32.mrf.mxu1 }
 0x1c5   :  { %v635_v14 = vmax.f32 %v559_v11, 0.0  ;;  %v561_v62 = vadd.f32 %v560_v12, %v1098_v5 }
 0x1c6   :  { %v564_v63 = vpop.f32.mrf.mxu1 }
 0x1c7   :  { %v1107_v16 = vpack.c.bf16 %v635_v14, %v633_v13  ;;  %v636_v17 = vmax.f32 %v561_v62, 0.0  ;;  %v565_v20 = vadd.f32 %v564_v63, %v1089_v60 }
 0x1c8   :  { %v566_v18 = vpop.f32.mrf.mxu1 }
 0x1c9   :  { %v1109_v19 = vpack.c.bf16 %v636_v17, %v634_v15  ;;  %v567_v22 = vadd.f32 %v566_v18, %v1098_v5  ;;  %v637_v25 = vmax.f32 %v565_v20, 0.0 }
 0x1ca   :  { %v568_v21 = vpop.f32.mrf.mxu1 }
 0x1cb   :  { %v569_v23 = vadd.f32 %v568_v21, %v1089_v60  ;;  %v638_v29 = vmax.f32 %v567_v22, 0.0 }
 0x1cc   :  { %v570_v24 = vpop.f32.mrf.mxu1 }
 0x1cd   :  { %v639_v26 = vmax.f32 %v569_v23, 0.0  ;;  %v571_v27 = vadd.f32 %v570_v24, %v1098_v5 }
 0x1ce   :  { %v574_v28 = vpop.f32.mrf.mxu1 }
 0x1cf   :  { %v1115_v30 = vpack.c.bf16 %v639_v26, %v637_v25  ;;  %v640_v31 = vmax.f32 %v571_v27, 0.0  ;;  %v575_v34 = vadd.f32 %v574_v28, %v1089_v60 }
 0x1d0   :  { %v576_v32 = vpop.f32.mrf.mxu1 }
 0x1d1   :  { %v1117_v33 = vpack.c.bf16 %v640_v31, %v638_v29  ;;  %v577_v36 = vadd.f32 %v576_v32, %v1098_v5  ;;  %v641_v39 = vmax.f32 %v575_v34, 0.0 }
 0x1d2   :  { %v578_v35 = vpop.f32.mrf.mxu1 }
 0x1d3   :  { %v579_v37 = vadd.f32 %v578_v35, %v1089_v60  ;;  %v642_v43 = vmax.f32 %v577_v36, 0.0 }
 0x1d4   :  { %v580_v38 = vpop.f32.mrf.mxu1 }
 0x1d5   :  { %v643_v40 = vmax.f32 %v579_v37, 0.0  ;;  %v581_v41 = vadd.f32 %v580_v38, %v1098_v5 }
 0x1d6   :  { %v584_v42 = vpop.f32.mrf.mxu1 }
 0x1d7   :  { %v1123_v44 = vpack.c.bf16 %v643_v40, %v641_v39  ;;  %v644_v45 = vmax.f32 %v581_v41, 0.0  ;;  %v585_v48 = vadd.f32 %v584_v42, %v1089_v60 }
 0x1d8   :  { %v1125_v46 = vpop.f32.mrf.mxu1 }
 0x1d9   :  { %v1127_v47 = vpack.c.bf16 %v644_v45, %v642_v43  ;;  %v645_v52 = vmax.f32 %v585_v48, 0.0 }
 0x1da   :  { %v588_v49 = vpop.f32.mrf.mxu1 }
 0x1db   :  { %v589_v50 = vadd.f32 %v588_v49, %v1089_v60 }
 0x1dc   :  { %v590_v51 = vpop.f32.mrf.mxu1 }
 0x1dd   :  { %v647_v53 = vmax.f32 %v589_v50, 0.0 }
 0x1de   :  { %v594_v54 = vpop.f32.mrf.mxu1 }
 0x1df   :  { %v1131_v55 = vpack.c.bf16 %v647_v53, %v645_v52 }
 0x1e0   :  { %v596_v56 = vpop.f32.mrf.mxu1 }
 0x1e1   :  { %v597_v45 = vadd.f32 %v596_v56, %v1098_v5 }
 0x1e2   :  { %v598_v57 = vpop.f32.mrf.mxu1 }
 0x1e3   :  { %v650_v52 = vmax.f32 %v597_v45, 0.0  ;;  %v599_v53 = vadd.f32 %v598_v57, %v1089_v60 }
 0x1e4   :  { %v600_v58 = vpop.f32.mrf.mxu1 }
 0x1e5   :  { %v601_v41 = vadd.f32 %v600_v58, %v1098_v5  ;;  %v587_v58 = vadd.f32 %v1125_v46, %v1098_v5 }
 0x1e6   :  { %v604_v59 = vpop.f32.mrf.mxu1 }
 0x1e7   :  { %v605_v43 = vadd.f32 %v604_v59, %v1089_v60  ;;  %v652_v49 = vmax.f32 %v601_v41, 0.0  ;;  %v651_v59 = vmax.f32 %v599_v53, 0.0 }
 0x1e8   :  { %v606_v3 = vpop.f32.mrf.mxu1 }
 0x1e9   :  { %v607_v34 = vadd.f32 %v606_v3, %v1098_v5  ;;  %v653_v50 = vmax.f32 %v605_v43, 0.0 }
 0x1ea   :  { %v608_v61 = vpop.f32.mrf.mxu1 }
 0x1eb   :  { %v654_v38 = vmax.f32 %v607_v34, 0.0  ;;  %v609_v39 = vadd.f32 %v608_v61, %v1089_v60  ;;  %v675_v61 = vpack.c.bf16 %v652_v49, %v650_v52 }
 0x1ec   :  { %v610_v1 = vpop.f32.mrf.mxu1 }
 0x1ed   :  { %v611_v29 = vadd.f32 %v610_v1, %v1098_v5  ;;  %v655_v48 = vmax.f32 %v609_v39, 0.0  ;;  %v591_v1 = vadd.f32 %v590_v51, %v1098_v5 }
 0x1ee   :  { %v614_v6 = vpop.f32.mrf.mxu1 }
 0x1ef   :  { %v615_v32 = vadd.f32 %v614_v6, %v1089_v60  ;;  %v656_v36 = vmax.f32 %v611_v29, 0.0  ;;  %v676_v3 = vpack.c.bf16 %v655_v48, %v653_v50  ;;  %v595_v6 = vadd.f32 %v594_v54, %v1089_v60 }
 0x1f0   :  { %v616_v8 = vpop.f32.mrf.mxu1  ;;  %v648_v56 = vmax.f32 %v591_v1, 0.0 }
 0x1f1   :  { %v617_v17 = vadd.f32 %v616_v8, %v1098_v5  ;;  %v657_v37 = vmax.f32 %v615_v32, 0.0  ;;  %v677_v42 = vpack.c.bf16 %v656_v36, %v654_v38  ;;  %v649_v8 = vmax.f32 %v595_v6, 0.0 }
 0x1f2   :  { %v618_v0 = vpop.f32.mrf.mxu1 }
 0x1f3   :  { %v658_v25 = vmax.f32 %v617_v17, 0.0  ;;  %v619_v27 = vadd.f32 %v618_v0, %v1089_v60  ;;  %v646_v0 = vmax.f32 %v587_v58, 0.0 }
 0x1f4   :  { %v620_v9 = vpop.f32.mrf.mxu1 }
 0x1f5   :  { %v621_v13 = vadd.f32 %v620_v9, %v1098_v5  ;;  %v659_v35 = vmax.f32 %v619_v27, 0.0  ;;  %v674_v9 = vpack.c.bf16 %v651_v59, %v649_v8 }
 0x1f6   :  { %v624_v10 = vpop.f32.mrf.mxu1 }
 0x1f7   :  { %v625_v63 = vadd.f32 %v624_v10, %v1089_v60  ;;  %v660_v21 = vmax.f32 %v621_v13, 0.0  ;;  %v678_v40 = vpack.c.bf16 %v659_v35, %v657_v37  ;;  %v673_v10 = vpack.c.bf16 %v648_v56, %v646_v0 }
 0x1f8   :  { %v626_v11 = vpop.f32.mrf.mxu1 }
 0x1f9   :  { %v627_v14 = vadd.f32 %v626_v11, %v1098_v5  ;;  %v661_v24 = vmax.f32 %v625_v63, 0.0  ;;  %v679_v31 = vpack.c.bf16 %v660_v21, %v658_v25 }
 0x1fa   :  { %v628_v12 = vpop.f32.mrf.mxu1 }
 0x1fb   :  { %v629_v62 = vadd.f32 %v628_v12, %v1089_v60  ;;  %v662_v22 = vmax.f32 %v627_v14, 0.0  ;;  %v683_v60 = vstv %s1174_s6 }
 0x1fc   :  { %v630_v15 = vpop.f32.mrf.mxu1 }
 0x1fd   :  { %v631_v18 = vadd.f32 %v630_v15, %v1098_v5  ;;  %v663_v20 = vmax.f32 %v629_v62, 0.0 }
 0x1ff   :  { %v664_v23 = vmax.f32 %v631_v18, 0.0  ;;  %v680_v28 = vpack.c.bf16 %v663_v20, %v661_v24 }
 0x201   :  { %v681_v26 = vpack.c.bf16 %v664_v23, %v662_v22 }
 0x203   :  { %709 = vmatprep.subr.bf16.mxu0 %v681_v26 }
 0x204   :  { %710 = vmatpush1.bf16.xpose.msra.mxu0 %v680_v28 }
 0x205   :  { %711 = vmatprep.subr.bf16.mxu0 %v679_v31 }
 0x20c   :  { %712 = vmatpush1.bf16.xpose.msra.mxu0 %v678_v40 }
 0x20d   :  { %713 = vmatprep.subr.bf16.mxu0 %v677_v42 }
 0x214   :  { %714 = vmatpush1.bf16.xpose.msra.mxu0 %v676_v3 }
 0x215   :  { %715 = vmatprep.subr.bf16.mxu0 %v675_v61 }
 0x21c   :  { %716 = vmatpush1.bf16.xpose.msra.mxu0 %v674_v9 }
 0x21d   :  { %717 = vmatprep.subr.bf16.mxu0 %v673_v10 }
 0x224   :  { %718 = vmatpush1.bf16.xpose.msra.mxu0 %v1131_v55 }
 0x225   :  { %719 = vmatprep.subr.bf16.mxu0 %v1127_v47 }
 0x22c   :  { %720 = vmatpush1.bf16.xpose.msra.mxu0 %v1123_v44 }
 0x22d   :  { %721 = vmatprep.subr.bf16.mxu0 %v1117_v33 }
 0x234   :  { %722 = vmatpush1.bf16.xpose.msra.mxu0 %v1115_v30 }
 0x235   :  { %723 = vmatprep.subr.bf16.mxu0 %v1109_v19 }
 0x23c   :  { %724 = vmatpush1.bf16.xpose.msra.mxu0 %v1107_v16 }
 0x243   :  { %742 = vmatmul.mubr.bf16.vlgmr.msra.gmra.mxu0 %v699_v7 }
 0x303   :  { %v743_v5 = vpop.f32.mrf.mxu0 }
 0x304   :  { %v744_v44 = vadd.f32 %v743_v5, %v683_v60 }
 0x305   :  { %v745_v33 = vpop.f32.mrf.mxu0 }
 0x306   :  { %749 = vst [vmem:[#allocation9] sm:$0x1] %v744_v44 }
 0x307   :  { %v746_v30 = vpop.f32.mrf.mxu0 }
 0x308   :  { %944 = shalt.err (!%p941_p5)
}
 0x309   :  { %759 = dma.vmem_to_hbm [thread:$0]  %s757_s22, 16, %s1175_s7, [#allocation5]   ;;  %v747_v4 = vpop.f32.mrf.mxu0 }
 0x30a   :  { %957 = dma.done.wait [#allocation5], 16  }
 0x30b   :  { %958 = vsyncadd [#allocation5], 4294967280 }
 0x30c   :  { %763 = vsyncpa [#allocation4], 1 }
 0x30d   :  { %764 = vsyncpa [#allocation7], 1 }
 0x30e   :  { %765 = vsyncpa [#allocation5], 1 }

</bundles_post_ra>
